<compile_context>
chip_gen: v6e
topology: v6e:2x2x1
jax: 0.10.0
libtpu: 0.0.40
codegen_flags: <defaults>
</compile_context>

<pallas_src>
import functools

import jax
import jax.numpy as jnp
from jax import lax
from jax.experimental import pallas as pl
from jax.experimental.pallas import tpu as pltpu


def _round_up(x, m):
    return ((x + m - 1) // m) * m


def _default_vmem_limit():
    """Generation-aware VMEM limit: ~75% of physical, capped at 100 MiB."""
    try:
        info = pltpu.get_tpu_info()
        cap = int(getattr(info, "vmem_capacity_bytes", 128 * 1024 * 1024))
    except Exception:
        cap = 128 * 1024 * 1024
    return int(min(cap * 3 // 4, 100 * 1024 * 1024))


def _supcon_kernel(*refs, inv_temp, eps_total, a_orig, n_orig,
                   tile_a, tile_n, use_codes, safe_divide):
    if use_codes:
        (anchor_ref, contrast_t_ref, acode_ref, ccode_ref,
         out_ref, m_sc, e_sc, s_sc, cnt_sc) = refs
    else:
        (anchor_ref, contrast_t_ref, mask_ref,
         out_ref, m_sc, e_sc, s_sc, cnt_sc) = refs

    a_blk = pl.program_id(0)
    n_blk = pl.program_id(1)
    n_last = pl.num_programs(1) - 1

    # Reset the online-softmax accumulators at the start of every anchor block.
    @pl.when(n_blk == 0)
    def _():
        m_sc[...] = jnp.full_like(m_sc, -jnp.inf)
        e_sc[...] = jnp.zeros_like(e_sc)
        s_sc[...] = jnp.zeros_like(s_sc)
        cnt_sc[...] = jnp.zeros_like(cnt_sc)

    # [tA, tN] raw similarity on the MXU.  NN contraction (contrast was
    # pre-transposed once in the wrapper), f32 accumulation, bf16-native feed.
    dot = lax.dot_general(
        anchor_ref[...], contrast_t_ref[...],
        dimension_numbers=(((1,), (0,)), ((), ())),
        preferred_element_type=jnp.float32,
    )

    # Global row / column indices for this tile.
    row_g = a_blk * tile_a + lax.broadcasted_iota(jnp.int32, (tile_a, tile_n), 0)
    col_g = n_blk * tile_n + lax.broadcasted_iota(jnp.int32, (tile_a, tile_n), 1)
    col_valid = col_g < n_orig                 # exclude lane padding
    not_self = (row_g != col_g) & col_valid    # logits_mask of the reference

    # --- Online (flash-style) max / denominator update, raw-dot units. ------
    # 1/temperature is folded into the exponents and the final multiply; the
    # exact per-row max is kept (required because of the +0.001*N term).
    blk_max = jnp.max(jnp.where(col_valid, dot, -jnp.inf), axis=1, keepdims=True)
    m_old = m_sc[...]
    m_new = jnp.maximum(m_old, blk_max)
    scale = jnp.exp((m_old - m_new) * inv_temp)     # 0 on the first step
    p = jnp.exp((dot - m_new) * inv_temp)
    e_sc[...] = e_sc[...] * scale + jnp.sum(jnp.where(not_self, p, 0.0),
                                            axis=1, keepdims=True)
    m_sc[...] = m_new

    # --- Positive-pair mask (built in-kernel when expressible as codes). ----
    if use_codes:
        pos_f = jnp.where((acode_ref[...] == ccode_ref[...]) & not_self, 1.0, 0.0)
    else:
        pos_f = mask_ref[...].astype(jnp.float32) * jnp.where(not_self, 1.0, 0.0)

    # Sum of positive raw logits and positive count are max-independent, so
    # they accumulate without rescaling.
    s_sc[...] += jnp.sum(pos_f * dot, axis=1, keepdims=True)
    cnt_sc[...] += jnp.sum(pos_f, axis=1, keepdims=True)

    # --- Finalize on the last contrast block. --------------------------------
    @pl.when(n_blk == n_last)
    def _():
        cnt = cnt_sc[...]
        # mean_log_prob_pos = invT*(S/cnt - M) - log(E + 0.001*N)
        mlp = inv_temp * (s_sc[...] / cnt - m_sc[...]) \
            - jnp.log(e_sc[...] + eps_total)
        if safe_divide:
            mlp = jnp.where(cnt > 0.0, mlp, 0.0)
        # Padded anchor rows are dropped via select (NaN does not propagate
        # from the unselected branch -- do NOT rewrite as a multiply).
        row = a_blk * tile_a + lax.broadcasted_iota(jnp.int32, (tile_a, 1), 0)
        partial = jnp.sum(jnp.where(row < a_orig, mlp, 0.0))
        # Lane-dense (8, 128) output block; wrapper reads element [0, 0].
        out_ref[...] = jnp.full((1, 8, 128), partial, dtype=jnp.float32)


def supcon_loss(features, labels=None, mask=None, *, temperature=0.2,
                contrast_mode="all", block_rows=256, block_cols=512,
                compute_dtype=jnp.bfloat16, safe_divide=False,
                vmem_limit_bytes=None):
    """JAX/Pallas equivalent of SupConLoss.forward.

    compute_dtype defaults to bfloat16 (f32 accumulation on the MXU); pass
    jnp.float32 for reference-grade numerics.
    """
    features = jnp.asarray(features)
    if features.ndim < 3:
        raise ValueError("`features` needs to be [bsz, n_views, ...]")
    if labels is not None and mask is not None:
        raise ValueError("Cannot define both `labels` and `mask`")

    bsz, n_views = features.shape[0], features.shape[1]
    feat = features.reshape(bsz, n_views, -1)
    d = feat.shape[-1]

    dtype = jnp.dtype(compute_dtype) if compute_dtype is not None else feat.dtype
    feat = feat.astype(dtype)

    # torch.cat(torch.unbind(features, dim=1), dim=0)  -> view-major stacking.
    contrast_feature = jnp.transpose(feat, (1, 0, 2)).reshape(n_views * bsz, d)
    if contrast_mode == "one":
        anchor_feature = feat[:, 0, :]
        anchor_count = 1
    elif contrast_mode == "all":
        anchor_feature = contrast_feature
        anchor_count = n_views
    else:
        raise ValueError(f"Unknown mode: {contrast_mode}")

    a_rows = bsz * anchor_count        # number of anchors (A)
    n_cols = bsz * n_views             # number of contrast samples (N)

    # Lane-aligned feature depth (exact zero padding for the dot product).
    dp = _round_up(d, 128)

    # Anchor row tiling (256 fills the 256x256 MXU on v6e/v7x).
    tile_a = min(_round_up(block_rows, 8), _round_up(a_rows, 8))
    a_pad = _round_up(a_rows, tile_a)

    # Contrast column tiling -- lane-dense, padded to a multiple of 128.
    tile_n = min(_round_up(block_cols, 128), _round_up(n_cols, 128))
    n_pad = _round_up(n_cols, tile_n)

    anchor_feature = jnp.pad(anchor_feature,
                             ((0, a_pad - a_rows), (0, dp - d)))
    # One-time host-side transpose -> [dp, n_pad] so the kernel uses a plain
    # NN contraction (no per-tile XLU transpose of the contrast tile).
    contrast_t = jnp.pad(contrast_feature,
                         ((0, n_pad - n_cols), (0, dp - d))).T

    grid_a = a_pad // tile_a
    grid_n = n_pad // tile_n

    use_codes = mask is None
    if use_codes:
        if labels is None:
            code = jnp.arange(bsz, dtype=jnp.int32)           # eye(bsz) mask
        else:
            labels = jnp.asarray(labels).reshape(-1)
            if labels.shape[0] != bsz:
                raise ValueError("Num of labels does not match num of features")
            code = labels.astype(jnp.int32)
        a_code = jnp.tile(code, anchor_count).reshape(a_rows, 1)
        a_code = jnp.pad(a_code, ((0, a_pad - a_rows), (0, 0)),
                         constant_values=-1)
        c_code = jnp.tile(code, n_views).reshape(1, n_cols)
        c_code = jnp.pad(c_code, ((0, 0), (0, n_pad - n_cols)),
                         constant_values=-2)
        extra_inputs = (a_code, c_code)
        extra_specs = [
            pl.BlockSpec((tile_a, 1), lambda i, n: (i, 0)),
            pl.BlockSpec((1, tile_n), lambda i, n: (0, n)),
        ]
    else:
        # Explicit (possibly asymmetric) mask: stream [tA, tN] mask tiles.
        mask_full = jnp.tile(jnp.asarray(mask, jnp.float32),
                             (anchor_count, n_views))
        mask_full = jnp.pad(mask_full,
                            ((0, a_pad - a_rows), (0, n_pad - n_cols)))
        extra_inputs = (mask_full,)
        extra_specs = [pl.BlockSpec((tile_a, tile_n), lambda i, n: (i, n))]

    if vmem_limit_bytes is None:
        vmem_limit_bytes = _default_vmem_limit()

    kernel = functools.partial(
        _supcon_kernel,
        inv_temp=float(1.0 / temperature),
        eps_total=float(0.001 * n_cols),   # per-element +0.001 over real N cols
        a_orig=a_rows,
        n_orig=n_cols,
        tile_a=tile_a,
        tile_n=tile_n,
        use_codes=use_codes,
        safe_divide=safe_divide,
    )

    partials = pl.pallas_call(
        kernel,
        out_shape=jax.ShapeDtypeStruct((grid_a, 8, 128), jnp.float32),
        grid=(grid_a, grid_n),
        in_specs=[
            pl.BlockSpec((tile_a, dp), lambda i, n: (i, 0)),    # anchor tile
            pl.BlockSpec((dp, tile_n), lambda i, n: (0, n)),    # contrast^T tile
            *extra_specs,
        ],
        out_specs=pl.BlockSpec((1, 8, 128), lambda i, n: (i, 0, 0)),
        scratch_shapes=[
            pltpu.VMEM((tile_a, 1), jnp.float32),   # running row max (raw dot)
            pltpu.VMEM((tile_a, 1), jnp.float32),   # running denominator sum
            pltpu.VMEM((tile_a, 1), jnp.float32),   # running sum(pos * dot)
            pltpu.VMEM((tile_a, 1), jnp.float32),   # running positive count
        ],
        compiler_params=pltpu.CompilerParams(
            dimension_semantics=("parallel", "arbitrary"),
            vmem_limit_bytes=int(vmem_limit_bytes),
        ),
    )(anchor_feature, contrast_t, *extra_inputs)

    # TODO(synk): for small dp the EUP exp stream (not the MXU) is the binding
    # slot on v6e/v7x; a bf16-exp variant could ~2x that but relaxes numerics.
    total = jnp.sum(partials[:, 0, 0])
    return -temperature * total / a_rows


def _supcon_loss_ref(features, labels=None, mask=None, *, temperature=0.2,
                     contrast_mode="all"):
    """Pure-JAX reference mirroring the PyTorch code (f32 math)."""
    bsz, n_views = features.shape[0], features.shape[1]
    feat = features.reshape(bsz, n_views, -1).astype(jnp.float32)
    if labels is None and mask is None:
        base_mask = jnp.eye(bsz, dtype=jnp.float32)
    elif labels is not None:
        labels = labels.reshape(-1, 1)
        base_mask = (labels == labels.T).astype(jnp.float32)
    else:
        base_mask = mask.astype(jnp.float32)
    contrast = jnp.concatenate([feat[:, v] for v in range(n_views)], axis=0)
    if contrast_mode == "one":
        anchor, anchor_count = feat[:, 0], 1
    else:
        anchor, anchor_count = contrast, n_views
    adc = jnp.matmul(anchor, contrast.T,
                     precision=jax.lax.Precision.HIGHEST) / temperature
    logits = adc - jnp.max(adc, axis=1, keepdims=True)
    a_rows, n_cols = anchor.shape[0], contrast.shape[0]
    mask_full = jnp.tile(base_mask, (anchor_count, n_views))
    logits_mask = jnp.ones((a_rows, n_cols), jnp.float32).at[
        jnp.arange(a_rows), jnp.arange(a_rows)].set(0.0)
    mask_full = mask_full * logits_mask
    exp_logits = jnp.exp(logits) * logits_mask + 0.001
    log_prob = logits - jnp.log(exp_logits.sum(1, keepdims=True))
    mlp = (mask_full * log_prob).sum(1) / mask_full.sum(1)
    return (-temperature * mlp).reshape(anchor_count, bsz).mean()


if __name__ == "__main__":
    key = jax.random.PRNGKey(0)
    k1, k2, k3, k4 = jax.random.split(key, 4)

    bsz, n_views, feat_dim = 8, 2, 128
    features = jax.random.normal(k1, (bsz, n_views, feat_dim), dtype=jnp.float32)
    features = features / jnp.linalg.norm(features, axis=-1, keepdims=True)
    labels = jax.random.randint(k2, (bsz,), 0, 3)

    # 1) Unsupervised (SimCLR), default bf16 compute vs f32 reference.
    out = supcon_loss(features, temperature=0.2)
    ref = _supcon_loss_ref(features, temperature=0.2)
    assert jnp.allclose(out, ref, rtol=5e-2, atol=5e-2), (out, ref)

    # 2) Supervised labels, f32 compute, tight tolerance.
    out_sup = supcon_loss(features, labels=labels, temperature=0.2,
                          compute_dtype=jnp.float32)
    ref_sup = _supcon_loss_ref(features, labels=labels, temperature=0.2)
    assert jnp.allclose(out_sup, ref_sup, rtol=1e-4, atol=1e-4), (out_sup, ref_sup)

    # 3) Explicit-mask fallback path (tiled mask blocks).
    expl_mask = (labels.reshape(-1, 1) == labels.reshape(1, -1)).astype(jnp.float32)
    out_m = supcon_loss(features, mask=expl_mask, temperature=0.2,
                        compute_dtype=jnp.float32)
    assert jnp.allclose(out_m, ref_sup, rtol=1e-4, atol=1e-4), (out_m, ref_sup)

    # 4) contrast_mode='one'.
    out_one = supcon_loss(features, labels=labels, temperature=0.2,
                          contrast_mode="one", compute_dtype=jnp.float32)
    ref_one = _supcon_loss_ref(features, labels=labels, temperature=0.2,
                               contrast_mode="one")
    assert jnp.allclose(out_one, ref_one, rtol=1e-4, atol=1e-4), (out_one, ref_one)

    # 5) Multi-block anchor grid (parallel axis) + row padding + dp padding.
    feats2 = jax.random.normal(k3, (9, n_views, 32), dtype=jnp.float32)
    feats2 = feats2 / jnp.linalg.norm(feats2, axis=-1, keepdims=True)
    out_p = supcon_loss(feats2, temperature=0.2, block_rows=8,
                        compute_dtype=jnp.float32)
    ref_p = _supcon_loss_ref(feats2, temperature=0.2)
    assert jnp.allclose(out_p, ref_p, rtol=1e-4, atol=1e-4), (out_p, ref_p)

    # 6) Multi-block contrast grid: 72*2 = 144 contrast columns, tile_n=128 ->
    #    2 N-steps, exercises the online max/denominator accumulation and
    #    column padding (and 96 -> 128 lane padding of the feature dim).
    feats3 = jax.random.normal(k4, (72, 2, 96), dtype=jnp.float32)
    feats3 = feats3 / jnp.linalg.norm(feats3, axis=-1, keepdims=True)
    labels3 = jax.random.randint(k2, (72,), 0, 5)
    out_big = supcon_loss(feats3, labels=labels3, temperature=0.2,
                          block_rows=64, block_cols=128,
                          compute_dtype=jnp.float32)
    ref_big = _supcon_loss_ref(feats3, labels=labels3, temperature=0.2)
    assert jnp.allclose(out_big, ref_big, rtol=1e-4, atol=1e-4), (out_big, ref_big)

    jax.block_until_ready((out, out_sup, out_m, out_one, out_p, out_big))
    print("KERNEL_OK")
</pallas_src>

<mosaic_0001>
module attributes {stable_mosaic.version = 11 : i64} {
  func.func @_supcon_kernel(%arg0: i32, %arg1: i32, %arg2: memref<16x128xbf16, #tpu.memory_space<vmem>>, %arg3: memref<128x128xbf16, #tpu.memory_space<vmem>>, %arg4: memref<16x1xi32, #tpu.memory_space<vmem>>, %arg5: memref<1x128xi32, #tpu.memory_space<vmem>>, %arg6: memref<1x8x128xf32, #tpu.memory_space<vmem>>, %arg7: memref<16x1xf32, #tpu.memory_space<vmem>>, %arg8: memref<16x1xf32, #tpu.memory_space<vmem>>, %arg9: memref<16x1xf32, #tpu.memory_space<vmem>>, %arg10: memref<16x1xf32, #tpu.memory_space<vmem>>) attributes {dimension_semantics = [#tpu.dimension_semantics<parallel>, #tpu.dimension_semantics<arbitrary>], iteration_bounds = array<i64: 1, 1>, scalar_prefetch = 0 : i64, scratch_operands = 4 : i64, tpu.core_type = #tpu.core_type<tc>, window_params = [{transform_indices = @transform_0, window_bounds = array<i64: 16, 128>}, {transform_indices = @transform_1, window_bounds = array<i64: 128, 128>}, {transform_indices = @transform_2, window_bounds = array<i64: 16, 1>}, {transform_indices = @transform_3, window_bounds = array<i64: 1, 128>}, {transform_indices = @transform_4, window_bounds = array<i64: 1, 8, 128>}]} {
    %c0_i32 = arith.constant 0 : i32
    %0 = arith.cmpi eq, %arg1, %c0_i32 : i32
    %1 = arith.extui %0 : i1 to i32
    %c0_i32_0 = arith.constant 0 : i32
    %2 = arith.cmpi ne, %1, %c0_i32_0 : i32
    scf.if %2 {
      %cst_37 = arith.constant 0xFF800000 : f32
      %65 = vector.broadcast %cst_37 : f32 to vector<16x1xf32>
      %c0_38 = arith.constant 0 : index
      %c0_39 = arith.constant 0 : index
      %66 = vector.load %arg7[%c0_38, %c0_39] : memref<16x1xf32, #tpu.memory_space<vmem>>, vector<16x1xf32>
      tpu.vector_store %arg7[%c0_38, %c0_39], %65 {strides = array<i32>} : memref<16x1xf32, #tpu.memory_space<vmem>>, vector<16x1xf32>,
      %cst_40 = arith.constant 0.000000e+00 : f32
      %67 = vector.broadcast %cst_40 : f32 to vector<16x1xf32>
      %c0_41 = arith.constant 0 : index
      %c0_42 = arith.constant 0 : index
      %68 = vector.load %arg8[%c0_41, %c0_42] : memref<16x1xf32, #tpu.memory_space<vmem>>, vector<16x1xf32>
      tpu.vector_store %arg8[%c0_41, %c0_42], %67 {strides = array<i32>} : memref<16x1xf32, #tpu.memory_space<vmem>>, vector<16x1xf32>,
      %cst_43 = arith.constant 0.000000e+00 : f32
      %69 = vector.broadcast %cst_43 : f32 to vector<16x1xf32>
      %c0_44 = arith.constant 0 : index
      %c0_45 = arith.constant 0 : index
      %70 = vector.load %arg9[%c0_44, %c0_45] : memref<16x1xf32, #tpu.memory_space<vmem>>, vector<16x1xf32>
      tpu.vector_store %arg9[%c0_44, %c0_45], %69 {strides = array<i32>} : memref<16x1xf32, #tpu.memory_space<vmem>>, vector<16x1xf32>,
      %cst_46 = arith.constant 0.000000e+00 : f32
      %71 = vector.broadcast %cst_46 : f32 to vector<16x1xf32>
      %c0_47 = arith.constant 0 : index
      %c0_48 = arith.constant 0 : index
      %72 = vector.load %arg10[%c0_47, %c0_48] : memref<16x1xf32, #tpu.memory_space<vmem>>, vector<16x1xf32>
      tpu.vector_store %arg10[%c0_47, %c0_48], %71 {strides = array<i32>} : memref<16x1xf32, #tpu.memory_space<vmem>>, vector<16x1xf32>,
    } else {
    }
    %c0 = arith.constant 0 : index
    %c0_1 = arith.constant 0 : index
    %3 = vector.load %arg2[%c0, %c0_1] : memref<16x128xbf16, #tpu.memory_space<vmem>>, vector<16x128xbf16>
    %c0_2 = arith.constant 0 : index
    %c0_3 = arith.constant 0 : index
    %4 = vector.load %arg3[%c0_2, %c0_3] : memref<128x128xbf16, #tpu.memory_space<vmem>>, vector<128x128xbf16>
    %cst = arith.constant dense<0.000000e+00> : vector<16x128xf32>
    %5 = tpu.matmul %3, %4, %cst {dimension_numbers = #tpu.dot_dimension_numbers<[1], [0], [0], [1], [0, 0, 1, 1], [], []>} : vector<16x128xbf16>, vector<128x128xbf16>, vector<16x128xf32> -> vector<16x128xf32>
    %c16_i32 = arith.constant 16 : i32
    %6 = arith.muli %arg0, %c16_i32 : i32
    %7 = tpu.iota {dimensions = array<i32: 0>} : vector<16x128xi32>
    %8 = vector.broadcast %6 : i32 to vector<16x128xi32>
    %9 = arith.addi %8, %7 : vector<16x128xi32>
    %c128_i32 = arith.constant 128 : i32
    %10 = arith.muli %arg1, %c128_i32 : i32
    %11 = tpu.iota {dimensions = array<i32: 1>} : vector<16x128xi32>
    %12 = vector.broadcast %10 : i32 to vector<16x128xi32>
    %13 = arith.addi %12, %11 : vector<16x128xi32>
    %c16_i32_4 = arith.constant 16 : i32
    %14 = vector.broadcast %c16_i32_4 : i32 to vector<16x128xi32>
    %15 = arith.cmpi slt, %13, %14 : vector<16x128xi32>
    %16 = arith.cmpi ne, %9, %13 : vector<16x128xi32>
    %17 = arith.andi %16, %15 : vector<16x128xi1>
    %cst_5 = arith.constant 0xFF800000 : f32
    %18 = vector.broadcast %cst_5 : f32 to vector<16x128xf32>
    %19 = arith.select %15, %5, %18 : vector<16x128xi1>, vector<16x128xf32>
    %cst_6 = arith.constant dense<0xFF800000> : vector<16xf32>
    %20 = vector.multi_reduction <maximumf>, %19, %cst_6 [1] : vector<16x128xf32> to vector<16xf32>
    %21 = vector.shape_cast %20 : vector<16xf32> to vector<16x1xf32>
    %c0_7 = arith.constant 0 : index
    %c0_8 = arith.constant 0 : index
    %22 = vector.load %arg7[%c0_7, %c0_8] : memref<16x1xf32, #tpu.memory_space<vmem>>, vector<16x1xf32>
    %23 = arith.maximumf %22, %21 : vector<16x1xf32>
    %24 = arith.subf %22, %23 : vector<16x1xf32>
    %cst_9 = arith.constant 5.000000e+00 : f32
    %25 = vector.broadcast %cst_9 : f32 to vector<16x1xf32>
    %26 = arith.mulf %24, %25 : vector<16x1xf32>
    %27 = math.exp %26 : vector<16x1xf32>
    %28 = vector.broadcast %23 : vector<16x1xf32> to vector<16x128xf32>
    %29 = arith.subf %5, %28 : vector<16x128xf32>
    %cst_10 = arith.constant 5.000000e+00 : f32
    %30 = vector.broadcast %cst_10 : f32 to vector<16x128xf32>
    %31 = arith.mulf %29, %30 : vector<16x128xf32>
    %32 = math.exp %31 : vector<16x128xf32>
    %c0_11 = arith.constant 0 : index
    %c0_12 = arith.constant 0 : index
    %33 = vector.load %arg8[%c0_11, %c0_12] : memref<16x1xf32, #tpu.memory_space<vmem>>, vector<16x1xf32>
    %34 = arith.mulf %33, %27 : vector<16x1xf32>
    %cst_13 = arith.constant 0.000000e+00 : f32
    %35 = vector.broadcast %cst_13 : f32 to vector<16x128xf32>
    %36 = arith.select %17, %32, %35 : vector<16x128xi1>, vector<16x128xf32>
    %cst_14 = arith.constant dense<0.000000e+00> : vector<16xf32>
    %37 = vector.multi_reduction <add>, %36, %cst_14 [1] : vector<16x128xf32> to vector<16xf32>
    %38 = vector.shape_cast %37 : vector<16xf32> to vector<16x1xf32>
    %39 = arith.addf %34, %38 : vector<16x1xf32>
    %c0_15 = arith.constant 0 : index
    %c0_16 = arith.constant 0 : index
    %40 = vector.load %arg8[%c0_15, %c0_16] : memref<16x1xf32, #tpu.memory_space<vmem>>, vector<16x1xf32>
    tpu.vector_store %arg8[%c0_15, %c0_16], %39 {strides = array<i32>} : memref<16x1xf32, #tpu.memory_space<vmem>>, vector<16x1xf32>,
    %c0_17 = arith.constant 0 : index
    %c0_18 = arith.constant 0 : index
    %41 = vector.load %arg7[%c0_17, %c0_18] : memref<16x1xf32, #tpu.memory_space<vmem>>, vector<16x1xf32>
    tpu.vector_store %arg7[%c0_17, %c0_18], %23 {strides = array<i32>} : memref<16x1xf32, #tpu.memory_space<vmem>>, vector<16x1xf32>,
    %c0_19 = arith.constant 0 : index
    %c0_20 = arith.constant 0 : index
    %42 = vector.load %arg4[%c0_19, %c0_20] : memref<16x1xi32, #tpu.memory_space<vmem>>, vector<16x1xi32>
    %c0_21 = arith.constant 0 : index
    %c0_22 = arith.constant 0 : index
    %43 = vector.load %arg5[%c0_21, %c0_22] : memref<1x128xi32, #tpu.memory_space<vmem>>, vector<1x128xi32>
    %44 = vector.broadcast %42 : vector<16x1xi32> to vector<16x128xi32>
    %45 = vector.broadcast %43 : vector<1x128xi32> to vector<16x128xi32>
    %46 = arith.cmpi eq, %44, %45 : vector<16x128xi32>
    %47 = arith.andi %46, %17 : vector<16x128xi1>
    %cst_23 = arith.constant 1.000000e+00 : f32
    %cst_24 = arith.constant 0.000000e+00 : f32
    %48 = vector.broadcast %cst_23 : f32 to vector<16x128xf32>
    %49 = vector.broadcast %cst_24 : f32 to vector<16x128xf32>
    %50 = arith.select %47, %48, %49 : vector<16x128xi1>, vector<16x128xf32>
    %c0_25 = arith.constant 0 : index
    %c0_26 = arith.constant 0 : index
    %51 = vector.load %arg9[%c0_25, %c0_26] : memref<16x1xf32, #tpu.memory_space<vmem>>, vector<16x1xf32>
    %52 = arith.mulf %50, %5 : vector<16x128xf32>
    %cst_27 = arith.constant dense<0.000000e+00> : vector<16xf32>
    %53 = vector.multi_reduction <add>, %52, %cst_27 [1] : vector<16x128xf32> to vector<16xf32>
    %54 = vector.shape_cast %53 : vector<16xf32> to vector<16x1xf32>
    %55 = arith.addf %51, %54 : vector<16x1xf32>
    %c0_28 = arith.constant 0 : index
    %c0_29 = arith.constant 0 : index
    %56 = vector.load %arg9[%c0_28, %c0_29] : memref<16x1xf32, #tpu.memory_space<vmem>>, vector<16x1xf32>
    tpu.vector_store %arg9[%c0_28, %c0_29], %55 {strides = array<i32>} : memref<16x1xf32, #tpu.memory_space<vmem>>, vector<16x1xf32>,
    %c0_30 = arith.constant 0 : index
    %c0_31 = arith.constant 0 : index
    %57 = vector.load %arg10[%c0_30, %c0_31] : memref<16x1xf32, #tpu.memory_space<vmem>>, vector<16x1xf32>
    %cst_32 = arith.constant dense<0.000000e+00> : vector<16xf32>
    %58 = vector.multi_reduction <add>, %50, %cst_32 [1] : vector<16x128xf32> to vector<16xf32>
    %59 = vector.shape_cast %58 : vector<16xf32> to vector<16x1xf32>
    %60 = arith.addf %57, %59 : vector<16x1xf32>
    %c0_33 = arith.constant 0 : index
    %c0_34 = arith.constant 0 : index
    %61 = vector.load %arg10[%c0_33, %c0_34] : memref<16x1xf32, #tpu.memory_space<vmem>>, vector<16x1xf32>
    tpu.vector_store %arg10[%c0_33, %c0_34], %60 {strides = array<i32>} : memref<16x1xf32, #tpu.memory_space<vmem>>, vector<16x1xf32>,
    %c0_i32_35 = arith.constant 0 : i32
    %62 = arith.cmpi eq, %arg1, %c0_i32_35 : i32
    %63 = arith.extui %62 : i1 to i32
    %c0_i32_36 = arith.constant 0 : i32
    %64 = arith.cmpi ne, %63, %c0_i32_36 : i32
    scf.if %64 {
      %c0_37 = arith.constant 0 : index
      %c0_38 = arith.constant 0 : index
      %65 = vector.load %arg10[%c0_37, %c0_38] : memref<16x1xf32, #tpu.memory_space<vmem>>, vector<16x1xf32>
      %c0_39 = arith.constant 0 : index
      %c0_40 = arith.constant 0 : index
      %66 = vector.load %arg9[%c0_39, %c0_40] : memref<16x1xf32, #tpu.memory_space<vmem>>, vector<16x1xf32>
      %67 = arith.divf %66, %65 : vector<16x1xf32>
      %c0_41 = arith.constant 0 : index
      %c0_42 = arith.constant 0 : index
      %68 = vector.load %arg7[%c0_41, %c0_42] : memref<16x1xf32, #tpu.memory_space<vmem>>, vector<16x1xf32>
      %69 = arith.subf %67, %68 : vector<16x1xf32>
      %cst_43 = arith.constant 5.000000e+00 : f32
      %70 = vector.broadcast %cst_43 : f32 to vector<16x1xf32>
      %71 = arith.mulf %70, %69 : vector<16x1xf32>
      %c0_44 = arith.constant 0 : index
      %c0_45 = arith.constant 0 : index
      %72 = vector.load %arg8[%c0_44, %c0_45] : memref<16x1xf32, #tpu.memory_space<vmem>>, vector<16x1xf32>
      %cst_46 = arith.constant 1.600000e-02 : f32
      %73 = vector.broadcast %cst_46 : f32 to vector<16x1xf32>
      %74 = arith.addf %72, %73 : vector<16x1xf32>
      %75 = math.log %74 : vector<16x1xf32>
      %76 = arith.subf %71, %75 : vector<16x1xf32>
      %c16_i32_47 = arith.constant 16 : i32
      %77 = arith.muli %arg0, %c16_i32_47 : i32
      %78 = tpu.iota {dimensions = array<i32: 0>} : vector<16x1xi32>
      %79 = vector.broadcast %77 : i32 to vector<16x1xi32>
      %80 = arith.addi %79, %78 : vector<16x1xi32>
      %c16_i32_48 = arith.constant 16 : i32
      %81 = vector.broadcast %c16_i32_48 : i32 to vector<16x1xi32>
      %82 = arith.cmpi slt, %80, %81 : vector<16x1xi32>
      %cst_49 = arith.constant 0.000000e+00 : f32
      %83 = vector.broadcast %cst_49 : f32 to vector<16x1xf32>
      %84 = arith.select %82, %76, %83 : vector<16x1xi1>, vector<16x1xf32>
      %85 = vector.shape_cast %84 : vector<16x1xf32> to vector<1x16x1xf32>
      %cst_50 = arith.constant dense<0.000000e+00> : vector<1xf32>
      %86 = vector.multi_reduction <add>, %85, %cst_50 [1, 2] : vector<1x16x1xf32> to vector<1xf32>
      %87 = vector.shape_cast %86 : vector<1xf32> to vector<1x1x1xf32>
      %88 = vector.extract %87[0, 0, 0] : f32 from vector<1x1x1xf32>
      %89 = vector.broadcast %88 : f32 to vector<1x8x128xf32>
      %c0_51 = arith.constant 0 : index
      %c0_52 = arith.constant 0 : index
      %c0_53 = arith.constant 0 : index
      %90 = vector.load %arg6[%c0_51, %c0_52, %c0_53] : memref<1x8x128xf32, #tpu.memory_space<vmem>>, vector<1x8x128xf32>
      tpu.vector_store %arg6[%c0_51, %c0_52, %c0_53], %89 {strides = array<i32>} : memref<1x8x128xf32, #tpu.memory_space<vmem>>, vector<1x8x128xf32>,
    } else {
    }
    return
  }
  func.func @transform_0(%arg0: i32, %arg1: i32) -> (i32, i32) {
    %c0_i32 = arith.constant 0 : i32
    %c0_i32_0 = arith.constant 0 : i32
    return %arg0, %c0_i32 : i32, i32
  }
  func.func @transform_1(%arg0: i32, %arg1: i32) -> (i32, i32) {
    %c0_i32 = arith.constant 0 : i32
    %c0_i32_0 = arith.constant 0 : i32
    return %c0_i32, %arg1 : i32, i32
  }
  func.func @transform_2(%arg0: i32, %arg1: i32) -> (i32, i32) {
    %c0_i32 = arith.constant 0 : i32
    %c0_i32_0 = arith.constant 0 : i32
    return %arg0, %c0_i32 : i32, i32
  }
  func.func @transform_3(%arg0: i32, %arg1: i32) -> (i32, i32) {
    %c0_i32 = arith.constant 0 : i32
    %c0_i32_0 = arith.constant 0 : i32
    return %c0_i32, %arg1 : i32, i32
  }
  func.func @transform_4(%arg0: i32, %arg1: i32) -> (i32, i32, i32) {
    %c0_i32 = arith.constant 0 : i32
    %c0_i32_0 = arith.constant 0 : i32
    %c0_i32_1 = arith.constant 0 : i32
    return %arg0, %c0_i32, %c0_i32_0 : i32, i32, i32
  }
}

</mosaic_0001>

<bundles_post_ra>
// kernel: tpu_custom_call.1
= control target key start
LH: loop header
LB: loop body
LE: loop exit
PB: predicated region body
PF: predicated region fallthrough
CT: control target
= control target key end

     0   :  { %9 = vsyncpa [#allocation7], 0  ;;  %s548_s0 = inlined_call_operand.vmem [shape: bf16[16,128], index: 0, kind: input, shape index: {}]   ;;  %s549_s1 = inlined_call_operand.hbm [shape: bf16[128,128], index: 1, kind: input, shape index: {}]   ;;  %s550_s2 = inlined_call_operand.vmem [shape: s32[16,1], index: 2, kind: input, shape index: {}]   ;;  %s551_s3 = inlined_call_operand.vmem [shape: s32[1,128], index: 3, kind: input, shape index: {}]   ;;  %s552_s4 = inlined_call_operand.hbm [shape: f32[1,8,128], index: 4, kind: output, shape index: {}]  }
   0x1   :  { %10 = vsyncpa [#allocation8], 0  ;;  %s450_s15 = smov [#allocation6]  }
   0x2   :  { %s18_s16 = sshll.u32 %s450_s15, 4  ;;  %s19_s16 = int_to_ptr.vmem [resolvable:$true] %s18_s16 }
   0x3   :  { %s414_s17 = scalar_lea.vmem %s19_s16, 1024  ;;  %p419_p1 = scmp.lt.s32.totalorder %s19_s16, %s19_s16 }
   0x4   :  { %p415_p0 = scmp.ne.s32.totalorder %s19_s16, %s414_s17  ;;  %p420_p2 = scmp.lt.s32.totalorder %s414_s17, %s414_s17 }
   0x6   :  { %p421_p3 = por %p420_p2, %p419_p1 }
   0x8   :  { %p422_p4 = pnand %p421_p3, %p415_p0 }
   0xa   :  { %425 = shalt.err (!%p422_p4)
}
   0xb   :  { %s451_s18 = smov 64   ;;  %s452_s19 = smov 4  }
   0xc   :  { %24 = dma.hbm_to_vmem [thread:$0]  %s549_s1, 1024, %s19_s16, [#allocation7], %s451_s18, %s451_s18, %s452_s19  }
   0xd   :  { %446 = dma.done.wait [#allocation7], 1024  }
   0xe   :  { %447 = vsyncadd [#allocation7], 4294966272  ;;  %v453_v0 = vmov 0.0   ;;  %vm454_vm0 = vmmov 0   ;;  %v381_v1 = vld [vmem:[#allocation6 + $0x38] sm:$0xff]   ;;  %v382_v2 = vld [vmem:[#allocation6 + $0x30] sm:$0xff]   ;;  %v160_v12 = vlaneseq }
   0xf   :  { %349 = vmatprep.subr.bf16.mxu0 %v453_v0  ;;  %365 = vmatprep.mubr.msk.bf16.mxu0 %vm454_vm0, %v453_v0  ;;  %v383_v3 = vld [vmem:[#allocation6 + $0x28] sm:$0xff]   ;;  %v384_v4 = vld [vmem:[#allocation6 + $0x20] sm:$0xff]   ;;  %v385_v5 = vld [vmem:[#allocation6 + $0x18] sm:$0xff]   ;;  %v455_v10 = vmov 0   ;;  %vm37_vm1 = vcmask 7168   ;;  %v456_v11 = vmov -inf  }
  0x10   :  { %350 = vmatpush3.bf16.msra.mxu0 %v381_v1  ;;  %v386_v6 = vld [vmem:[#allocation6 + $0x10] sm:$0xff]   ;;  %v387_v7 = vld [vmem:[#allocation6 + $0x8] sm:$0xff]   ;;  %v388_v8 = vld [vmem:[#allocation6] sm:$0xff]   ;;  %380 = vset.pattern.permute.xlu0 %v455_v10  ;;  %38 = vst.msk [vmem:[#allocation2] sm:$0xff] %vm37_vm1, %v456_v11  ;;  %v168_v13 = vand.u32 127, %v160_v12  ;;  %v161_v30 = vshrl.u32 %v160_v12, 7 }
  0x11   :  { %351 = vmatprep.subr.bf16.mxu0 %v453_v0  ;;  %v389_v9 = vld [vmem:[%s548_s0] sm:$0xff]   ;;  %379 = vset.pattern.permute.xlu1 %v455_v10  ;;  %39 = vst.msk [vmem:[#allocation2 + $0x8] sm:$0xff] %vm37_vm1, %v456_v11  ;;  %40 = vst.msk [vmem:[#allocation3] sm:$0xff] %vm37_vm1, %v453_v0  ;;  %v230_v29 = vld [vmem:[%s550_s2 + $0x8] sm:$0xff] }
  0x12   :  { %41 = vst.msk [vmem:[#allocation3 + $0x8] sm:$0xff] %vm37_vm1, %v453_v0  ;;  %42 = vst.msk [vmem:[#allocation4] sm:$0xff] %vm37_vm1, %v453_v0  ;;  %vm171_vm2 = vcmp.lt.s32.totalorder %v168_v13, 16  ;;  %v229_v20 = vld [vmem:[%s550_s2] sm:$0xff]  ;;  %vm172_vm3 = vcmp.ne.s32.totalorder %v161_v30, %v168_v13  ;;  %v162_v36 = vadd.s32 8, %v161_v30  ;;  %s457_s2 = smov [#allocation9]  }
  0x13   :  { %43 = vst.msk [vmem:[#allocation4 + $0x8] sm:$0xff] %vm37_vm1, %v453_v0  ;;  %44 = vst.msk [vmem:[#allocation5] sm:$0xff] %vm37_vm1, %v453_v0  ;;  %v339_v31 = vld [vmem:[%s551_s3] ss:$0 sm:$0xff]  ;;  %s321_s3 = sshll.u32 %s457_s2, 4  ;;  %s322_s3 = int_to_ptr.vmem [resolvable:$true] %s321_s3 }
  0x14   :  { %352 = vmatpush3.bf16.msra.mxu0 %v382_v2  ;;  %45 = vst.msk [vmem:[#allocation5 + $0x8] sm:$0xff] %vm37_vm1, %v453_v0  ;;  %vm526_vm5 = vmand %vm172_vm3, %vm171_vm2  ;;  %vm173_vm7 = vcmp.ne.s32.totalorder %v162_v36, %v168_v13  ;;  %s426_s29 = scalar_lea.vmem %s322_s3, 128  ;;  %p431_p6 = scmp.lt.s32.totalorder %s322_s3, %s322_s3 }
  0x15   :  { %353 = vmatprep.subr.bf16.mxu0 %v453_v0  ;;  %vm175_vm8 = vmand %vm173_vm7, %vm171_vm2  ;;  %p427_p5 = scmp.ne.s32.totalorder %s322_s3, %s426_s29  ;;  %p432_p7 = scmp.lt.s32.totalorder %s426_s29, %s426_s29 }
  0x17   :  { %v182_v21 = vld [vmem:[#allocation2] sm:$0xff]  ;;  %p433_p8 = por %p432_p7, %p431_p6 }
  0x18   :  { %354 = vmatpush3.bf16.msra.mxu0 %v383_v3  ;;  %v183_v24 = vld [vmem:[#allocation2 + $0x8] sm:$0xff]  ;;  %v212_v63 = vld [vmem:[#allocation3] sm:$0xff] }
  0x19   :  { %355 = vmatprep.subr.bf16.mxu0 %v453_v0  ;;  %v213_v3 = vld [vmem:[#allocation3 + $0x8] sm:$0xff]  ;;  %p434_p9 = pnand %p433_p8, %p427_p5 }
  0x1a   :  { %v260_v52 = vld [vmem:[#allocation5] sm:$0xff]  ;;  %v249_v13 = vld [vmem:[#allocation4 + $0x8] sm:$0xff] }
  0x1b   :  { %v261_v59 = vld [vmem:[#allocation5 + $0x8] sm:$0xff] }
  0x1c   :  { %356 = vmatpush3.bf16.msra.mxu0 %v384_v4 }
  0x1d   :  { %357 = vmatprep.subr.bf16.mxu0 %v453_v0 }
  0x20   :  { %358 = vmatpush3.bf16.msra.mxu0 %v385_v5 }
  0x21   :  { %359 = vmatprep.subr.bf16.mxu0 %v453_v0 }
  0x24   :  { %360 = vmatpush3.bf16.msra.mxu0 %v386_v6 }
  0x25   :  { %361 = vmatprep.subr.bf16.mxu0 %v453_v0 }
  0x28   :  { %362 = vmatpush3.bf16.msra.mxu0 %v387_v7 }
  0x29   :  { %363 = vmatprep.subr.bf16.mxu0 %v453_v0 }
  0x2c   :  { %364 = vmatpush3.bf16.msra.mxu0 %v388_v8 }
  0x2f   :  { %366 = vmatmul.mubr.bf16.vlgmr.msra.gmra.mxu0 %v389_v9  ;;  %v248_v9 = vld [vmem:[#allocation4] sm:$0xff] }
  0xef   :  { %v152_v14 = vpop.f32.mrf.mxu0 }
  0xf0   :  { %v176_v15 = vsel %vm171_vm2, %v152_v14, -inf }
  0xf1   :  { %178 = vmax.xlane.f32.xlu0 %v176_v15  ;;  %v367_v16 = vpop.f32.mrf.mxu0 }
  0xf3   :  { %v155_v17 = vpop.f32.mrf.mxu0 }
  0xf4   :  { %v177_v18 = vsel %vm171_vm2, %v155_v17, -inf }
  0xf5   :  { %180 = vmax.xlane.f32.xlu0 %v177_v18  ;;  %v368_v19 = vpop.f32.mrf.mxu0 }
 0x10b   :  { %233 = vperm.xlu0 %380, %v229_v20  }
 0x17a   :  { %v179_v22 = vpop.xlane.xlu0 %178 }
 0x17b   :  { %v184_v23 = vmax.f32 %v182_v21, %v179_v22 }
 0x17d   :  { %v186_v25 = vsub.f32 %v182_v21, %v184_v23  ;;  %227 = vst.msk [vmem:[#allocation2] sm:$0xff] %vm37_vm1, %v184_v23  ;;  %196 = vperm.xlu1 %379, %v184_v23  }
 0x17e   :  { %v181_v26 = vpop.xlane.xlu0 %180 }
 0x17f   :  { %v185_v27 = vmax.f32 %v183_v24, %v181_v26  ;;  %v188_v55 = vmul.f32 5.0, %v186_v25 }
 0x181   :  { %v187_v28 = vsub.f32 %v183_v24, %v185_v27  ;;  %228 = vst.msk [vmem:[#allocation2 + $0x8] sm:$0xff] %vm37_vm1, %v185_v27  ;;  %201 = vperm.xlu1 %379, %v185_v27   ;;  %v190_v56 = vmul.f32 1.442695, %v188_v55 }
 0x183   :  { %v189_v57 = vmul.f32 5.0, %v187_v28 }
 0x184   :  { %v281_v26 = vld [vmem:[#allocation2] sm:$0xff] }
 0x185   :  { %236 = vperm.xlu1 %379, %v230_v29   ;;  %v192_v58 = vmul.f32 1.442695, %v189_v57 }
 0x186   :  { %v234_v32 = vpop.permute.xlu0 %233 }
 0x187   :  { %vm242_vm4 = vcmp.eq.s32.totalorder %v234_v32, %v339_v31 }
 0x188   :  { %vm244_vm6 = vmand %vm242_vm4, %vm526_vm5  ;;  %v282_v29 = vld [vmem:[#allocation2 + $0x8] sm:$0xff] }
 0x189   :  { %v246_v34 = vsel %vm244_vm6, 1.0, %v453_v0 }
 0x18a   :  { %v250_v50 = vmul.f32 %v246_v34, %v152_v14 }
 0x1a9   :  { %262 = vadd.xlane.f32.xlu1 %v246_v34 }
 0x1f8   :  { %v197_v35 = vpop.permute.xlu1 %196 }
 0x1f9   :  { %v204_v37 = vsub.f32 %v152_v14, %v197_v35 }
 0x1fb   :  { %v206_v38 = vmul.f32 5.0, %v204_v37 }
 0x1fc   :  { %v202_v39 = vpop.permute.xlu1 %201 }
 0x1fd   :  { %v208_v40 = vmul.f32 1.442695, %v206_v38  ;;  %v205_v41 = vsub.f32 %v155_v17, %v202_v39 }
 0x1ff   :  { %390 = vpow2.f32 %v208_v40  ;;  %v207_v42 = vmul.f32 5.0, %v205_v41 }
 0x200   :  { %v237_v43 = vpop.permute.xlu1 %236 }
 0x201   :  { %v210_v44 = vmul.f32 1.442695, %v207_v42  ;;  %vm243_vm9 = vcmp.eq.s32.totalorder %v237_v43, %v339_v31 }
 0x202   :  { %vm245_vm10 = vmand %vm243_vm9, %vm175_vm8 }
 0x203   :  { %392 = vpow2.f32 %v210_v44  ;;  %v247_v45 = vsel %vm245_vm10, 1.0, %v453_v0 }
 0x204   :  { %264 = vadd.xlane.f32.xlu1 %v247_v45  ;;  %v251_v51 = vmul.f32 %v247_v45, %v155_v17  ;;  %394 = vpow2.f32 %v190_v56 }
 0x205   :  { %396 = vpow2.f32 %v192_v58 }
 0x20c   :  { %v391_v46 = vpop.eup %390 }
 0x20d   :  { %v216_v47 = vsel %vm526_vm5, %v391_v46, 0.0 }
 0x20e   :  { %218 = vadd.xlane.f32.xlu0 %v216_v47 }
 0x210   :  { %v393_v48 = vpop.eup %392 }
 0x211   :  { %v217_v49 = vsel %vm175_vm8, %v393_v48, 0.0  ;;  %v395_v62 = vpop.eup %394 }
 0x212   :  { %220 = vadd.xlane.f32.xlu1 %v217_v49  ;;  %v214_v0 = vmul.f32 %v395_v62, %v212_v63  ;;  %v397_v1 = vpop.eup %396 }
 0x213   :  { %v215_v6 = vmul.f32 %v397_v1, %v213_v3 }
 0x216   :  { %252 = vadd.xlane.f32.xlu1 %v250_v50 }
 0x21a   :  { %254 = vadd.xlane.f32.xlu1 %v251_v51 }
 0x232   :  { %v263_v53 = vpop.xlane.xlu1 %262 }
 0x233   :  { %v266_v54 = vadd.f32 %v263_v53, %v260_v52 }
 0x235   :  { %268 = vst.msk [vmem:[#allocation5] sm:$0xff] %vm37_vm1, %v266_v54 }
 0x23c   :  { %v273_v5 = vld [vmem:[#allocation5] sm:$0xff] }
 0x23d   :  { %398 = vrcp.f32 %v273_v5 }
 0x24a   :  { %v399_v20 = vpop.eup %398 }
 0x28d   :  { %v265_v60 = vpop.xlane.xlu1 %264 }
 0x28e   :  { %v267_v61 = vadd.f32 %v265_v60, %v261_v59 }
 0x290   :  { %269 = vst.msk [vmem:[#allocation5 + $0x8] sm:$0xff] %vm37_vm1, %v267_v61 }
 0x297   :  { %v219_v2 = vpop.xlane.xlu0 %218  ;;  %v274_v10 = vld [vmem:[#allocation5 + $0x8] sm:$0xff] }
 0x298   :  { %v222_v4 = vadd.f32 %v219_v2, %v214_v0  ;;  %400 = vrcp.f32 %v274_v10 }
 0x29a   :  { %225 = vst.msk [vmem:[#allocation3] sm:$0xff] %vm37_vm1, %v222_v4 }
 0x29b   :  { %v221_v7 = vpop.xlane.xlu1 %220 }
 0x29c   :  { %v223_v8 = vadd.f32 %v221_v7, %v215_v6 }
 0x29e   :  { %226 = vst.msk [vmem:[#allocation3 + $0x8] sm:$0xff] %vm37_vm1, %v223_v8 }
 0x29f   :  { %v253_v11 = vpop.xlane.xlu1 %252 }
 0x2a0   :  { %v256_v12 = vadd.f32 %v253_v11, %v248_v9 }
 0x2a1   :  { %v287_v14 = vld [vmem:[#allocation3] sm:$0xff] }
 0x2a2   :  { %258 = vst.msk [vmem:[#allocation4] sm:$0xff] %vm37_vm1, %v256_v12  ;;  %v289_v15 = vadd.f32 0.016, %v287_v14 }
 0x2a3   :  { %v255_v16 = vpop.xlane.xlu1 %254 }
 0x2a4   :  { %v257_v17 = vadd.f32 %v255_v16, %v249_v13  ;;  %402 = vlog2.f32 %v289_v15 }
 0x2a5   :  { %v288_v18 = vld [vmem:[#allocation3 + $0x8] sm:$0xff]  ;;  %v401_v23 = vpop.eup %400 }
 0x2a6   :  { %259 = vst.msk [vmem:[#allocation4 + $0x8] sm:$0xff] %vm37_vm1, %v257_v17  ;;  %v290_v19 = vadd.f32 0.016, %v288_v18 }
 0x2a8   :  { %404 = vlog2.f32 %v290_v19 }
 0x2a9   :  { %v275_v21 = vld [vmem:[#allocation4] sm:$0xff] }
 0x2aa   :  { %v278_v22 = vmul.f32 %v399_v20, %v275_v21 }
 0x2ac   :  { %v283_v27 = vsub.f32 %v278_v22, %v281_v26 }
 0x2ad   :  { %v276_v24 = vld [vmem:[#allocation4 + $0x8] sm:$0xff] }
 0x2ae   :  { %v280_v25 = vmul.f32 %v401_v23, %v276_v24  ;;  %v285_v32 = vmul.f32 5.0, %v283_v27 }
 0x2b0   :  { %v284_v30 = vsub.f32 %v280_v25, %v282_v29 }
 0x2b1   :  { %v403_v28 = vpop.eup %402 }
 0x2b2   :  { %v292_v31 = vmul.f32 0.6931472, %v403_v28  ;;  %v286_v34 = vmul.f32 5.0, %v284_v30 }
 0x2b4   :  { %v295_v36 = vsub.f32 %v285_v32, %v292_v31 }
 0x2b5   :  { %v405_v33 = vpop.eup %404 }
 0x2b6   :  { %v294_v35 = vmul.f32 0.6931472, %v405_v33  ;;  %v301_v38 = vsel %vm37_vm1, %v295_v36, 0.0 }
 0x2b8   :  { %v296_v37 = vsub.f32 %v286_v34, %v294_v35 }
 0x2ba   :  { %v302_v39 = vsel %vm37_vm1, %v296_v37, 0.0 }
 0x2bb   :  { %v303_v40 = vadd.f32 %v302_v39, %v301_v38 }
 0x2bd   :  { %304 = vadd.xlane.f32.xlu1 %v303_v40 }
 0x346   :  { %v305_v41 = vpop.xlane.xlu1 %304 }
 0x347   :  { %v306_v42 = vrot.slane %v305_v41, 4 }
 0x349   :  { %v307_v43 = vadd.f32 %v306_v42, %v305_v41 }
 0x34b   :  { %v308_v44 = vrot.slane %v307_v43, 2 }
 0x34d   :  { %v309_v45 = vadd.f32 %v308_v44, %v307_v43 }
 0x34f   :  { %v310_v46 = vrot.slane %v309_v45, 1 }
 0x351   :  { %v311_v47 = vadd.f32 %v310_v46, %v309_v45 }
 0x353   :  { %369 = vpush %v311_v47 }
 0x384   :  { %s370_s28 = spop %369 }
 0x385   :  { %v313_v48 = vstv %s370_s28 }
 0x386   :  { %314 = vst [vmem:[#allocation9] sm:$0xff] %v313_v48 }
 0x387   :  { %437 = shalt.err (!%p434_p9)
}
 0x388   :  { %324 = dma.vmem_to_hbm [thread:$0]  %s322_s3, 128, %s552_s4, [#allocation8]  }
 0x389   :  { %448 = dma.done.wait [#allocation8], 128  }
 0x38a   :  { %449 = vsyncadd [#allocation8], 4294967168 }
 0x38b   :  { %328 = vsyncpa [#allocation7], 1 }
 0x38c   :  { %329 = vsyncpa [#allocation8], 1 }

</bundles_post_ra>
